<compile_context>
chip_gen: v7x
topology: tpu7x:2x2x1
jax: 0.10.0
libtpu: 0.0.40
codegen_flags: <defaults>
</compile_context>

<pallas_src>
import functools

import jax
import jax.numpy as jnp
from jax.experimental import pallas as pl
from jax.experimental.pallas import tpu as pltpu

EPS = 1e-5


def _ln_withbias_kernel(x_ref, w_ref, b_ref, o_ref):
    # x_ref block: (1, C, T); normalize over C (axis=1).  Two-pass centered
    # variance in f32 (avoids E[x^2]-mu^2 cancellation; extra VPU work is
    # hidden under the HBM roofline).
    x = x_ref[...].astype(jnp.float32)                      # (1, C, T)
    mu = jnp.mean(x, axis=1, keepdims=True)                 # (1, 1, T)
    xc = x - mu
    var = jnp.mean(xc * xc, axis=1, keepdims=True)          # unbiased=False
    inv = jax.lax.rsqrt(var + EPS)
    w = w_ref[...].astype(jnp.float32)                      # (1, C, 1)
    b = b_ref[...].astype(jnp.float32)                      # (1, C, 1)
    o_ref[...] = (xc * inv * w + b).astype(o_ref.dtype)


def _ln_biasfree_kernel(x_ref, w_ref, o_ref):
    # BiasFree variant: variance is centered, but x itself is NOT centered
    # (matches Restormer's BiasFree_LayerNorm / torch.var semantics) -- this
    # is intentional, do not "fix" it.
    x = x_ref[...].astype(jnp.float32)
    mu = jnp.mean(x, axis=1, keepdims=True)
    xc = x - mu
    var = jnp.mean(xc * xc, axis=1, keepdims=True)
    inv = jax.lax.rsqrt(var + EPS)
    w = w_ref[...].astype(jnp.float32)
    o_ref[...] = (x * inv * w).astype(o_ref.dtype)


def _choose_tile_hw(hw, c, itemsize, batch):
    """Pick the lane tile (multiple of 128, or the full hw).

    Dtype-aware VMEM budget: each resident element costs
      4*itemsize  (double-buffered input + output tiles, input dtype)
      + ~12 bytes (in-kernel f32 temps: x_f32, centered x, result)
    Target ~30 MiB total so the plan fits v7x's 64 MiB physical VMEM with
    headroom and clears v5e/v6e scoped defaults once vmem_limit_bytes is set.
    Lane cap 16384 keeps a single tile well below the budget even for tiny C.
    Finally, guarantee enough parallel grid steps (b * n_hw >= ~8) so both
    v7x TensorCores stay busy on small-batch shapes.
    """
    cost_per_elem = 4 * itemsize + 12
    budget_bytes = 30 * 1024 * 1024
    lane_budget = (budget_bytes // cost_per_elem) // max(c, 1)
    t = max(128, min((lane_budget // 128) * 128, 16384))
    if t >= hw:
        t = hw
        n = 1
    else:
        n = pl.cdiv(hw, t)

    min_steps = 8
    if batch * n < min_steps and hw > 128:
        want = pl.cdiv(min_steps, max(batch, 1))
        t = max(128, ((hw // want) // 128) * 128)   # always < hw when hw > 128
    return t


@functools.partial(
    jax.jit, static_argnames=("layernorm_type", "tile_hw", "donate_x"))
def capo_layernorm(x, weight, bias, layernorm_type="WithBias", tile_hw=None,
                   donate_x=False):
    """Equivalent of models/CAPO.py::LayerNorm.forward.

    x: (B, C, H, W) NCHW; weight: (C,); bias: (C,) (ignored when BiasFree).
    donate_x=True aliases x's buffer into the output (same HBM traffic, lower
    peak footprint) -- only use when the caller no longer needs x.
    """
    b, c, h, w = x.shape
    hw = h * w
    x3 = x.reshape(b, c, hw)                       # free reshape, no transpose
    itemsize = jnp.dtype(x.dtype).itemsize
    if tile_hw is None:
        tile_hw = _choose_tile_hw(hw, c, itemsize, b)
    n_hw = pl.cdiv(hw, tile_hw)                    # ragged last tile: padded
    # lanes carry garbage through rsqrt but lane columns are independent and
    # padded lanes are masked on store, so results are correct.

    x_spec = pl.BlockSpec((1, c, tile_hw), lambda bi, ti: (bi, 0, ti))
    p_spec = pl.BlockSpec((1, c, 1), lambda bi, ti: (0, 0, 0))
    out_spec = pl.BlockSpec((1, c, tile_hw), lambda bi, ti: (bi, 0, ti))

    w3 = weight.reshape(1, c, 1)
    if layernorm_type == "BiasFree":
        kernel = _ln_biasfree_kernel
        args = (x3, w3)
        in_specs = [x_spec, p_spec]
    else:
        kernel = _ln_withbias_kernel
        args = (x3, w3, bias.reshape(1, c, 1))
        in_specs = [x_spec, p_spec, p_spec]

    # Explicit scoped-VMEM request: enough for the chosen plan, >= 32 MiB so
    # defaults never bind, <= 60 MiB so it always fits v7x's 64 MiB physical.
    vmem_need = c * tile_hw * (4 * itemsize + 12) + (1 << 20)
    vmem_limit = int(min(max(vmem_need, 32 << 20), 60 << 20))

    cost = pl.CostEstimate(
        flops=10 * b * c * hw,                      # means, center, scale, bias
        transcendentals=b * hw,                     # one rsqrt per spatial pos
        bytes_accessed=2 * b * c * hw * itemsize,   # read x + write y (HBM-bound)
    )

    y3 = pl.pallas_call(
        kernel,
        out_shape=jax.ShapeDtypeStruct((b, c, hw), x.dtype),
        grid_spec=pltpu.PrefetchScalarGridSpec(
            num_scalar_prefetch=0,
            grid=(b, n_hw),                         # >= ~8 steps -> both v7x TCs busy
            in_specs=in_specs,
            out_specs=out_spec,
        ),
        compiler_params=pltpu.CompilerParams(
            dimension_semantics=("parallel", "parallel"),
            vmem_limit_bytes=vmem_limit,
        ),
        cost_estimate=cost,
        input_output_aliases={0: 0} if donate_x else {},
    )(*args)
    return y3.reshape(b, c, h, w)


def _reference(x, weight, bias, layernorm_type):
    b, c, h, w = x.shape
    x3 = jnp.transpose(x, (0, 2, 3, 1)).reshape(b, h * w, c).astype(jnp.float32)
    mu = jnp.mean(x3, axis=-1, keepdims=True)
    var = jnp.mean((x3 - mu) ** 2, axis=-1, keepdims=True)
    if layernorm_type == "BiasFree":
        y = x3 / jnp.sqrt(var + EPS) * weight
    else:
        y = (x3 - mu) / jnp.sqrt(var + EPS) * weight + bias
    return jnp.transpose(y.reshape(b, h, w, c), (0, 3, 1, 2)).astype(x.dtype)


if __name__ == "__main__":
    ok = True

    # Primary small test at the module's NCHW convention (auto tile plan ->
    # grid (2, 2): enough parallel steps for 2 TensorCores even at hw=256).
    B, C, H, W = 2, 4, 16, 16
    x = jax.random.normal(jax.random.PRNGKey(0), (B, C, H, W), dtype=jnp.float32)
    weight = jnp.ones((C,), dtype=jnp.float32)   # nn.Parameter(torch.ones)
    bias = jnp.zeros((C,), dtype=jnp.float32)    # nn.Parameter(torch.zeros)
    for ln_type in ("WithBias", "BiasFree"):
        out = jax.block_until_ready(
            capo_layernorm(x, weight, bias, layernorm_type=ln_type))
        ref = _reference(x, weight, bias, ln_type)
        ok &= out.shape == (B, C, H, W)
        ok &= bool(jnp.allclose(out, ref, atol=2e-5, rtol=2e-5))

    # Secondary test: realistic channel count, H*W not a multiple of the tile,
    # forcing the multi-tile + masked-last-tile path.
    B2, C2, H2, W2 = 2, 48, 40, 40               # H*W = 1600
    x2 = jax.random.normal(jax.random.PRNGKey(1), (B2, C2, H2, W2), dtype=jnp.float32)
    w2 = 1.0 + 0.1 * jax.random.normal(jax.random.PRNGKey(2), (C2,), dtype=jnp.float32)
    b2 = 0.1 * jax.random.normal(jax.random.PRNGKey(3), (C2,), dtype=jnp.float32)
    for ln_type in ("WithBias", "BiasFree"):
        # explicit tile (grid (2, 4) with ragged last tile)
        out = jax.block_until_ready(
            capo_layernorm(x2, w2, b2, layernorm_type=ln_type, tile_hw=512))
        ref = _reference(x2, w2, b2, ln_type)
        ok &= bool(jnp.allclose(out, ref, atol=2e-5, rtol=2e-5))
        # auto tile plan (min-step logic picks tile 384 -> grid (2, 5))
        out = jax.block_until_ready(
            capo_layernorm(x2, w2, b2, layernorm_type=ln_type))
        ok &= bool(jnp.allclose(out, ref, atol=2e-5, rtol=2e-5))

    if ok:
        print("KERNEL_OK")
</pallas_src>

<mosaic_0001>
module attributes {stable_mosaic.version = 11 : i64} {
  func.func @_ln_withbias_kernel(%arg0: i32, %arg1: i32, %arg2: memref<1x4x128xf32, #tpu.memory_space<vmem>>, %arg3: memref<1x4x1xf32, #tpu.memory_space<vmem>>, %arg4: memref<1x4x1xf32, #tpu.memory_space<vmem>>, %arg5: memref<1x4x128xf32, #tpu.memory_space<vmem>>) attributes {dimension_semantics = [#tpu.dimension_semantics<parallel>, #tpu.dimension_semantics<parallel>], iteration_bounds = array<i64: 2, 2>, scalar_prefetch = 0 : i64, scratch_operands = 0 : i64, tpu.core_type = #tpu.core_type<tc>, window_params = [{transform_indices = @transform_0, window_bounds = array<i64: 1, 4, 128>}, {pipeline_mode = #tpu.pipeline_mode<synchronous>, transform_indices = @transform_1, window_bounds = array<i64: 1, 4, 1>}, {pipeline_mode = #tpu.pipeline_mode<synchronous>, transform_indices = @transform_2, window_bounds = array<i64: 1, 4, 1>}, {transform_indices = @transform_3, window_bounds = array<i64: 1, 4, 128>}]} {
    %c0 = arith.constant 0 : index
    %c0_0 = arith.constant 0 : index
    %c0_1 = arith.constant 0 : index
    %0 = vector.load %arg2[%c0, %c0_0, %c0_1] : memref<1x4x128xf32, #tpu.memory_space<vmem>>, vector<1x4x128xf32>
    %cst = arith.constant dense<0.000000e+00> : vector<1x128xf32>
    %1 = vector.multi_reduction <add>, %0, %cst [1] : vector<1x4x128xf32> to vector<1x128xf32>
    %2 = vector.shape_cast %1 : vector<1x128xf32> to vector<1x1x128xf32>
    %cst_2 = arith.constant 4.000000e+00 : f32
    %3 = vector.broadcast %cst_2 : f32 to vector<1x1x128xf32>
    %4 = arith.divf %2, %3 : vector<1x1x128xf32>
    %5 = vector.broadcast %4 : vector<1x1x128xf32> to vector<1x4x128xf32>
    %6 = arith.subf %0, %5 : vector<1x4x128xf32>
    %7 = arith.mulf %6, %6 : vector<1x4x128xf32>
    %cst_3 = arith.constant dense<0.000000e+00> : vector<1x128xf32>
    %8 = vector.multi_reduction <add>, %7, %cst_3 [1] : vector<1x4x128xf32> to vector<1x128xf32>
    %9 = vector.shape_cast %8 : vector<1x128xf32> to vector<1x1x128xf32>
    %cst_4 = arith.constant 4.000000e+00 : f32
    %10 = vector.broadcast %cst_4 : f32 to vector<1x1x128xf32>
    %11 = arith.divf %9, %10 : vector<1x1x128xf32>
    %cst_5 = arith.constant 9.99999974E-6 : f32
    %12 = vector.broadcast %cst_5 : f32 to vector<1x1x128xf32>
    %13 = arith.addf %11, %12 : vector<1x1x128xf32>
    %14 = math.rsqrt %13 : vector<1x1x128xf32>
    %c0_6 = arith.constant 0 : index
    %c0_7 = arith.constant 0 : index
    %c0_8 = arith.constant 0 : index
    %15 = vector.load %arg3[%c0_6, %c0_7, %c0_8] : memref<1x4x1xf32, #tpu.memory_space<vmem>>, vector<1x4x1xf32>
    %c0_9 = arith.constant 0 : index
    %c0_10 = arith.constant 0 : index
    %c0_11 = arith.constant 0 : index
    %16 = vector.load %arg4[%c0_9, %c0_10, %c0_11] : memref<1x4x1xf32, #tpu.memory_space<vmem>>, vector<1x4x1xf32>
    %17 = vector.broadcast %14 : vector<1x1x128xf32> to vector<1x4x128xf32>
    %18 = arith.mulf %6, %17 : vector<1x4x128xf32>
    %19 = vector.broadcast %15 : vector<1x4x1xf32> to vector<1x4x128xf32>
    %20 = arith.mulf %18, %19 : vector<1x4x128xf32>
    %21 = vector.broadcast %16 : vector<1x4x1xf32> to vector<1x4x128xf32>
    %22 = arith.addf %20, %21 : vector<1x4x128xf32>
    %c0_12 = arith.constant 0 : index
    %c0_13 = arith.constant 0 : index
    %c0_14 = arith.constant 0 : index
    %23 = vector.load %arg5[%c0_12, %c0_13, %c0_14] : memref<1x4x128xf32, #tpu.memory_space<vmem>>, vector<1x4x128xf32>
    tpu.vector_store %arg5[%c0_12, %c0_13, %c0_14], %22 {strides = array<i32>} : memref<1x4x128xf32, #tpu.memory_space<vmem>>, vector<1x4x128xf32>,
    return
  }
  func.func @transform_0(%arg0: i32, %arg1: i32) -> (i32, i32, i32) {
    %c0_i32 = arith.constant 0 : i32
    %c0_i32_0 = arith.constant 0 : i32
    return %arg0, %c0_i32, %arg1 : i32, i32, i32
  }
  func.func @transform_1(%arg0: i32, %arg1: i32) -> (i32, i32, i32) {
    %c0_i32 = arith.constant 0 : i32
    %c0_i32_0 = arith.constant 0 : i32
    %c0_i32_1 = arith.constant 0 : i32
    %c0_i32_2 = arith.constant 0 : i32
    return %c0_i32, %c0_i32_0, %c0_i32_1 : i32, i32, i32
  }
  func.func @transform_2(%arg0: i32, %arg1: i32) -> (i32, i32, i32) {
    %c0_i32 = arith.constant 0 : i32
    %c0_i32_0 = arith.constant 0 : i32
    %c0_i32_1 = arith.constant 0 : i32
    %c0_i32_2 = arith.constant 0 : i32
    return %c0_i32, %c0_i32_0, %c0_i32_1 : i32, i32, i32
  }
  func.func @transform_3(%arg0: i32, %arg1: i32) -> (i32, i32, i32) {
    %c0_i32 = arith.constant 0 : i32
    %c0_i32_0 = arith.constant 0 : i32
    return %arg0, %c0_i32, %arg1 : i32, i32, i32
  }
}

</mosaic_0001>

<bundles_post_ra>
// kernel: capo_layernorm.1
= control target key start
LH: loop header
LB: loop body
LE: loop exit
PB: predicated region body
PF: predicated region fallthrough
CT: control target
= control target key end

     0   :  { %s443_s12 = smov 0   ;;  %s445_s13 = smov 0   ;;  %s507_s0 = inlined_call_operand.vmem [shape: f32[2,4,256], index: 0, kind: input, shape index: {}]   ;;  %s508_s1 = inlined_call_operand.vmem [shape: f32[1,4,1], index: 1, kind: input, shape index: {}]   ;;  %s509_s2 = inlined_call_operand.vmem [shape: f32[1,4,1], index: 2, kind: input, shape index: {}]   ;;  %s510_s3 = inlined_call_operand.vmem [shape: f32[2,4,256], index: 3, kind: output, shape index: {}]  }
   0x1   :  { %s447_s14 = smov 0   ;;  %s449_s15 = smov 0  }
   0x2   :  { %s451_s16 = smov 0  }
   0x3 LB: > { %s22_s17 = sadd.s32 1, %s412_s14  ;;  %s25_s18 = sadd.s32 1, %s416_s15  ;;  %s420_s16 = sphi %s451_s16, %s13_s16   ;;  %s416_s15 = sphi %s449_s15, %s514_s15   ;;  %s412_s14 = sphi %s447_s14, %s513_s14   ;;  %s408_s13 = sphi %s445_s13, %s512_s13   ;;  %s404_s12 = sphi %s443_s12, %s511_s12  }
   0x4   : > { %p23_p0 = scmp.ge.s32.totalorder %s22_s17, 2  ;;  %p331_p1 = scmp.ge.s32.totalorder %s420_s16, 1 }
   0x5   : > { %p156_p2 = scmp.lt.s32.totalorder %s420_s16, 5 }
   0x6   : > { %s516_s17 = smov (%p23_p0, %s22_s17), 0  ;;  %s518_s18 = smov (!%p23_p0, %s25_s18), %s416_s15 }
   0x7   : > { %p157_p3 = pnand %p331_p1, %p156_p2  ;;  %p27_p4 = scmp.ge.s32.totalorder %s518_s18, 2 }
   0x8   : > { %v225_v0 = vld [vmem:[%s508_s1] sm:$0xf] (!%p157_p3)  ;;  %v422_v1 = vmov (!%p157_p3), 0   ;;  %p186_p5 = scmp.lt.s32.totalorder (!%p157_p3), %s408_s13, 1  ;;  %p188_p6 = scmp.lt.s32.totalorder (!%p157_p3), %s404_s12, 1  ;;  %vm203_vm0 = vcmask (!%p157_p3), 1043456  }
   0x9   : > { %s520_s18 = smov (%p27_p4, %s518_s18), 0  ;;  %160 = sbr.rel (%p157_p3) target bundleno = 146 (0x92), region = 32 }
   0xa   : > { %379 = vset.pattern.permute.xlu0 (!%p157_p3), %v422_v1  ;;  %v226_v2 = vld [vmem:[%s509_s2] sm:$0xf] (!%p157_p3) }
   0xb   : > { %230 = vperm.xlu0 (!%p157_p3), %379, %v225_v0  }
   0xf   : > { %236 = vperm.xlu0 (!%p157_p3), %379, %v226_v2  }
  0x10   : > { %s522_s13 = smov (!%p186_p5, %s408_s13), 1  ;;  %s524_s12 = smov (!%p188_p6, %s404_s12), 1 }
  0x11   : > { %s332_s23 = sshll.u32 %s522_s13, 1 }
  0x12   : > { %s479_s24 = sadd.s32 %s332_s23, %s524_s12 }
  0x13   : > { %s333_s25 = sshll.u32 %s479_s24, 2 }
  0x14   : > { %s193_s28 = scalar_lea.vmem %s507_s0, %s333_s25  ;;  %s201_s4 = scalar_lea.vmem %s510_s3, %s333_s25 }
  0x15   : > { %v202_v3 = vld [vmem:[%s193_s28] sm:$0xf] }
  0x16   : > { %v204_v4 = vsel %vm203_vm0, %v202_v3, 0.0 }
  0x17   : > { %v205_v5 = vrot.slane %v204_v4, 4 }
  0x19   : > { %v206_v6 = vadd.f32 %v205_v5, %v204_v4 }
  0x1b   : > { %v207_v7 = vrot.slane %v206_v6, 2 }
  0x1d   : > { %v208_v8 = vadd.f32 %v207_v7, %v206_v6 }
  0x1f   : > { %v209_v9 = vrot.slane %v208_v8, 1 }
  0x21   : > { %v210_v10 = vadd.f32 %v209_v9, %v208_v8 }
  0x23   : > { %v212_v11 = vmul.f32 0.25, %v210_v10 }
  0x25   : > { %v213_v12 = vsub.f32 %v202_v3, %v212_v11 }
  0x27   : > { %v214_v13 = vmul.f32 %v213_v12, %v213_v12 }
  0x29   : > { %v215_v14 = vsel %vm203_vm0, %v214_v13, 0.0 }
  0x2a   : > { %v216_v15 = vrot.slane %v215_v14, 4 }
  0x2c   : > { %v217_v16 = vadd.f32 %v216_v15, %v215_v14 }
  0x2e   : > { %v218_v17 = vrot.slane %v217_v16, 2 }
  0x30   : > { %v219_v18 = vadd.f32 %v218_v17, %v217_v16 }
  0x32   : > { %v220_v19 = vrot.slane %v219_v18, 1 }
  0x34   : > { %v221_v20 = vadd.f32 %v220_v19, %v219_v18 }
  0x36   : > { %v222_v21 = vmul.f32 0.25, %v221_v20 }
  0x38   : > { %v223_v22 = vadd.f32 1e-05, %v222_v21 }
  0x3a   : > { %380 = vrsqrt.f32 %v223_v22 }
  0x44   : > { %v381_v23 = vpop.eup %380 }
  0x45   : > { %v227_v24 = vmul.f32 %v381_v23, %v213_v12 }
  0x8a   : > { %v231_v25 = vpop.permute.xlu0 %230 }
  0x8b   : > { %v233_v26 = vmul.f32 %v231_v25, %v227_v24 }
  0x8e   : > { %v237_v27 = vpop.permute.xlu0 %236 }
  0x8f   : > { %v239_v28 = vadd.f32 %v237_v27, %v233_v26 }
  0x91   : > { %240 = vst [vmem:[%s201_s4] sm:$0xf] %v239_v28 }
  0x92 PF: > { %s13_s16 = sadd.s32 1, %s420_s16   ;;  %s511_s12 = smov %s412_s14 }
  0x93   : > { %p10_p7 = scmp.ge.s32.totalorder %s13_s16, 6   ;;  %s512_s13 = smov %s416_s15 }
  0x94   : > { %s513_s14 = smov %s516_s17  ;;  %s514_s15 = smov %s520_s18 }
  0x95   :  { %12 = sbr.rel (!%p10_p7) target bundleno = 3 (0x3), region = 62 }

</bundles_post_ra>
